<compile_context>
chip_gen: v6e
topology: v6e:2x2x1
jax: 0.10.0
libtpu: 0.0.40
codegen_flags: <defaults>
</compile_context>

<pallas_src>
import functools

import jax
import jax.numpy as jnp
from jax.experimental import pallas as pl
from jax.experimental.pallas import tpu as pltpu


HEAD_W = 128   # lane-dense fused score head width (cols 0..2 are real)


# ----------------------------------------------------------------------------
# Pallas kernel: one (TM, *) row-tile of nodes per grid step.
#   h0  = [x_seed, x_node] @ W_emb                  (2 -> H, no bias)
#   h1  = swish(h0 @ W1_t + b1)
#   h2  = swish(h1 @ W2_t + b2)
#   out = h2 @ W_head                               (H -> 128, cols 0..2 real)
#         col 0   = node_score
#         col 1:3 = stopping scores
# ----------------------------------------------------------------------------
def agent_kernel(x2_ref, wemb_ref, w1_ref, b1_ref, w2_ref, b2_ref,
                 whead_ref, out_ref):
    x2 = x2_ref[...]                                             # (TM, 2)

    h0 = jnp.dot(x2, wemb_ref[...],
                 preferred_element_type=jnp.float32)             # (TM, H)

    z1 = jnp.dot(h0, w1_ref[...],
                 preferred_element_type=jnp.float32) + b1_ref[...]
    h1 = z1 * jax.nn.sigmoid(z1)                                 # Swish

    z2 = jnp.dot(h1, w2_ref[...],
                 preferred_element_type=jnp.float32) + b2_ref[...]
    h2 = z2 * jax.nn.sigmoid(z2)                                 # Swish

    out_ref[...] = jnp.dot(h2, whead_ref[...],
                           preferred_element_type=jnp.float32)   # (TM, 128)


def _round_up(x, m):
    return ((x + m - 1) // m) * m


def _resident(shape):
    # Whole-array block that stays VMEM-resident across the row grid.
    return pl.BlockSpec(shape, lambda i: (0,) * len(shape))


@functools.partial(jax.jit, static_argnames=("tm",))
def _agent_dense_padded(x2_pad, w_emb, w1_t, b1, w2_t, b2, w_head, *, tm):
    """x2_pad: (N_pad, 2) with N_pad % tm == 0. Returns (N_pad, HEAD_W)."""
    n_pad = x2_pad.shape[0]
    H = w_emb.shape[1]
    f32 = jnp.float32
    grid = (n_pad // tm,)

    # advisory cost: 3 matmuls + 2 sigmoids per row-tile
    flops = 2 * n_pad * (2 * H + H * H * 2 + H * HEAD_W)
    bytes_accessed = (x2_pad.size + w_emb.size + w1_t.size + b1.size
                      + w2_t.size + b2.size + w_head.size
                      + n_pad * HEAD_W) * 4

    return pl.pallas_call(
        agent_kernel,
        out_shape=jax.ShapeDtypeStruct((n_pad, HEAD_W), f32),
        grid=grid,
        in_specs=[
            pl.BlockSpec((tm, 2), lambda i: (i, 0)),   # node features: tiled
            _resident(w_emb.shape),                    # (2, H)
            _resident(w1_t.shape),                     # (H, H)
            _resident(b1.shape),                       # (1, H)
            _resident(w2_t.shape),                     # (H, H)
            _resident(b2.shape),                       # (1, H)
            _resident(w_head.shape),                   # (H, 128)
        ],
        out_specs=pl.BlockSpec((tm, HEAD_W), lambda i: (i, 0)),
        compiler_params=pltpu.CompilerParams(
            dimension_semantics=("parallel",)),
        cost_estimate=pl.CostEstimate(
            flops=flops,
            transcendentals=2 * n_pad * H,
            bytes_accessed=bytes_accessed),
    )(x2_pad, w_emb, w1_t, b1, w2_t, b2, w_head)


def agent_dense(x_seeds, x_nodes, params, *, tm=512):
    """Runs the Pallas kernel over all N nodes.

    Returns (node_scores (N,), stop_scores (N, 2))."""
    f32 = jnp.float32
    N = x_seeds.shape[0]

    # Row tile: multiple of 8 (sublane), capped so small graphs use one step.
    tm = min(tm, _round_up(max(N, 8), 8))
    n_pad = _round_up(N, tm)

    x2 = jnp.stack([x_seeds.astype(f32), x_nodes.astype(f32)], axis=1)  # (N, 2)
    if n_pad != N:
        x2 = jnp.pad(x2, ((0, n_pad - N), (0, 0)))  # padded rows sliced off below

    out = _agent_dense_padded(
        x2,
        params["w_emb"], params["w1_t"], params["b1"],
        params["w2_t"], params["b2"], params["w_head"],
        tm=tm)

    out = out[:N]
    node_scores = out[:, 0]
    stop_scores = out[:, 1:3]
    return node_scores, stop_scores


def agent_forward(x_seeds, x_nodes, indptr, params):
    """Full Agent.forward. indptr: list of (startpoint, endpoint, candidate_endpoint)."""
    node_scores, stop_scores = agent_dense(x_seeds, x_nodes, params)

    batch = []
    for startpoint, endpoint, candidate_endpoint in indptr:
        if startpoint == endpoint:
            raise ValueError("Finished Episode!")
        # mean(h[s:e]) @ W_stop_t == mean(stop_scores[s:e])  (linear, no bias)
        stop_node_scores = jnp.mean(stop_scores[startpoint:endpoint], axis=0)   # (2,)
        stopping_logits = jax.nn.log_softmax(stop_node_scores)                  # (2,)
        node_logits = jax.nn.log_softmax(node_scores[startpoint:candidate_endpoint])
        logits = jnp.concatenate(
            [node_logits + stopping_logits[0], stopping_logits[1:]], axis=0)
        batch.append(logits)
    return batch


# ----------------------------------------------------------------------------
# Pure-JAX reference (same math, no Pallas) for a sanity check.
# ----------------------------------------------------------------------------
def agent_forward_ref(x_seeds, x_nodes, indptr, params):
    x2 = jnp.stack([x_seeds, x_nodes], axis=1).astype(jnp.float32)  # (N, 2)
    h = x2 @ params["w_emb"]
    z1 = h @ params["w1_t"] + params["b1"]
    h = z1 * jax.nn.sigmoid(z1)
    z2 = h @ params["w2_t"] + params["b2"]
    h = z2 * jax.nn.sigmoid(z2)
    node_scores = (h @ params["w_head"][:, 0:1])[:, 0]
    stop_scores = h @ params["w_head"][:, 1:3]
    out = []
    for s, e, c in indptr:
        stopping_logits = jax.nn.log_softmax(jnp.mean(stop_scores[s:e], axis=0))
        node_logits = jax.nn.log_softmax(node_scores[s:c])
        out.append(jnp.concatenate(
            [node_logits + stopping_logits[0], stopping_logits[1:]], axis=0))
    return out


def make_params(hidden_size, key, zero_init_heads=True):
    """Builds kernel-layout params.

    w_emb  : (2, H)   -- rows = [seed_embedding.weight.T, node_embedding.weight.T]
    w1_t/b1, w2_t/b2  -- the two Linear(H,H)+Swish blocks (weights transposed)
    w_head : (H, 128) -- col 0 = node_score_layer.weight.T,
                         cols 1:3 = stopping_score_layer.weight.T, rest zero.
    The PyTorch module zero-initializes both score heads (zero_init_heads=True);
    set False to exercise the head path numerically in tests.
    """
    f32 = jnp.float32
    k1, k2, k3, k4, k5, k6, k7, k8 = jax.random.split(key, 8)
    scale = 1.0 / jnp.sqrt(hidden_size)

    w_seed = jax.random.normal(k1, (1, hidden_size), f32)
    w_node = jax.random.normal(k2, (1, hidden_size), f32)
    w_emb = jnp.concatenate([w_seed, w_node], axis=0)              # (2, H)

    if zero_init_heads:
        w_ns = jnp.zeros((hidden_size, 1), f32)
        w_stop = jnp.zeros((hidden_size, 2), f32)
    else:
        w_ns = jax.random.normal(k7, (hidden_size, 1), f32) * scale
        w_stop = jax.random.normal(k8, (hidden_size, 2), f32) * scale
    w_head = jnp.zeros((hidden_size, HEAD_W), f32)
    w_head = w_head.at[:, 0:1].set(w_ns).at[:, 1:3].set(w_stop)    # (H, 128)

    return {
        "w_emb": w_emb,
        "w1_t": jax.random.normal(k3, (hidden_size, hidden_size), f32) * scale,
        "b1": jax.random.normal(k4, (1, hidden_size), f32) * 0.1,
        "w2_t": jax.random.normal(k5, (hidden_size, hidden_size), f32) * scale,
        "b2": jax.random.normal(k6, (1, hidden_size), f32) * 0.1,
        "w_head": w_head,
    }


if __name__ == "__main__":
    hidden_size = 32
    N = 16

    key = jax.random.PRNGKey(0)
    kp, ks, kn = jax.random.split(key, 3)
    # non-zero heads so the fused (H,128) head path is actually exercised
    params = make_params(hidden_size, kp, zero_init_heads=False)

    x_seeds = jax.random.normal(ks, (N,), jnp.float32)
    x_nodes = jax.random.normal(kn, (N,), jnp.float32)
    # two "episodes": (startpoint, endpoint, candidate_endpoint)
    indptr = [(0, 5, 8), (8, 12, 16)]

    out = agent_forward(x_seeds, x_nodes, indptr, params)
    out = [jax.block_until_ready(o) for o in out]

    ref = agent_forward_ref(x_seeds, x_nodes, indptr, params)
    for o, r in zip(out, ref):
        assert o.shape == r.shape
        assert jnp.max(jnp.abs(o - r)) < 1e-4, jnp.max(jnp.abs(o - r))

    print("KERNEL_OK")
</pallas_src>

<mosaic_0001>
module attributes {stable_mosaic.version = 11 : i64} {
  func.func @agent_kernel(%arg0: i32, %arg1: memref<16x2xf32, #tpu.memory_space<vmem>>, %arg2: memref<2x32xf32, #tpu.memory_space<vmem>>, %arg3: memref<32x32xf32, #tpu.memory_space<vmem>>, %arg4: memref<1x32xf32, #tpu.memory_space<vmem>>, %arg5: memref<32x32xf32, #tpu.memory_space<vmem>>, %arg6: memref<1x32xf32, #tpu.memory_space<vmem>>, %arg7: memref<32x128xf32, #tpu.memory_space<vmem>>, %arg8: memref<16x128xf32, #tpu.memory_space<vmem>>) attributes {dimension_semantics = [#tpu.dimension_semantics<parallel>], iteration_bounds = array<i64: 1>, scalar_prefetch = 0 : i64, scratch_operands = 0 : i64, tpu.core_type = #tpu.core_type<tc>, window_params = [{transform_indices = @transform_0, window_bounds = array<i64: 16, 2>}, {pipeline_mode = #tpu.pipeline_mode<synchronous>, transform_indices = @transform_1, window_bounds = array<i64: 2, 32>}, {pipeline_mode = #tpu.pipeline_mode<synchronous>, transform_indices = @transform_2, window_bounds = array<i64: 32, 32>}, {pipeline_mode = #tpu.pipeline_mode<synchronous>, transform_indices = @transform_3, window_bounds = array<i64: 1, 32>}, {pipeline_mode = #tpu.pipeline_mode<synchronous>, transform_indices = @transform_4, window_bounds = array<i64: 32, 32>}, {pipeline_mode = #tpu.pipeline_mode<synchronous>, transform_indices = @transform_5, window_bounds = array<i64: 1, 32>}, {pipeline_mode = #tpu.pipeline_mode<synchronous>, transform_indices = @transform_6, window_bounds = array<i64: 32, 128>}, {transform_indices = @transform_7, window_bounds = array<i64: 16, 128>}]} {
    %c0 = arith.constant 0 : index
    %c0_0 = arith.constant 0 : index
    %0 = vector.load %arg1[%c0, %c0_0] : memref<16x2xf32, #tpu.memory_space<vmem>>, vector<16x2xf32>
    %c0_1 = arith.constant 0 : index
    %c0_2 = arith.constant 0 : index
    %1 = vector.load %arg2[%c0_1, %c0_2] : memref<2x32xf32, #tpu.memory_space<vmem>>, vector<2x32xf32>
    %cst = arith.constant dense<0.000000e+00> : vector<16x32xf32>
    %2 = tpu.matmul %0, %1, %cst {dimension_numbers = #tpu.dot_dimension_numbers<[1], [0], [0], [1], [0, 0, 1, 1], [], []>} : vector<16x2xf32>, vector<2x32xf32>, vector<16x32xf32> -> vector<16x32xf32>
    %c0_3 = arith.constant 0 : index
    %c0_4 = arith.constant 0 : index
    %3 = vector.load %arg3[%c0_3, %c0_4] : memref<32x32xf32, #tpu.memory_space<vmem>>, vector<32x32xf32>
    %cst_5 = arith.constant dense<0.000000e+00> : vector<16x32xf32>
    %4 = tpu.matmul %2, %3, %cst_5 {dimension_numbers = #tpu.dot_dimension_numbers<[1], [0], [0], [1], [0, 0, 1, 1], [], []>} : vector<16x32xf32>, vector<32x32xf32>, vector<16x32xf32> -> vector<16x32xf32>
    %c0_6 = arith.constant 0 : index
    %c0_7 = arith.constant 0 : index
    %5 = vector.load %arg4[%c0_6, %c0_7] : memref<1x32xf32, #tpu.memory_space<vmem>>, vector<1x32xf32>
    %6 = vector.broadcast %5 : vector<1x32xf32> to vector<16x32xf32>
    %7 = arith.addf %4, %6 : vector<16x32xf32>
    %8 = arith.negf %7 : vector<16x32xf32>
    %9 = math.exp %8 : vector<16x32xf32>
    %cst_8 = arith.constant 1.000000e+00 : f32
    %10 = vector.broadcast %cst_8 : f32 to vector<16x32xf32>
    %11 = arith.addf %10, %9 : vector<16x32xf32>
    %12 = arith.divf %10, %11 : vector<16x32xf32>
    %13 = arith.mulf %7, %12 : vector<16x32xf32>
    %c0_9 = arith.constant 0 : index
    %c0_10 = arith.constant 0 : index
    %14 = vector.load %arg5[%c0_9, %c0_10] : memref<32x32xf32, #tpu.memory_space<vmem>>, vector<32x32xf32>
    %cst_11 = arith.constant dense<0.000000e+00> : vector<16x32xf32>
    %15 = tpu.matmul %13, %14, %cst_11 {dimension_numbers = #tpu.dot_dimension_numbers<[1], [0], [0], [1], [0, 0, 1, 1], [], []>} : vector<16x32xf32>, vector<32x32xf32>, vector<16x32xf32> -> vector<16x32xf32>
    %c0_12 = arith.constant 0 : index
    %c0_13 = arith.constant 0 : index
    %16 = vector.load %arg6[%c0_12, %c0_13] : memref<1x32xf32, #tpu.memory_space<vmem>>, vector<1x32xf32>
    %17 = vector.broadcast %16 : vector<1x32xf32> to vector<16x32xf32>
    %18 = arith.addf %15, %17 : vector<16x32xf32>
    %19 = arith.negf %18 : vector<16x32xf32>
    %20 = math.exp %19 : vector<16x32xf32>
    %cst_14 = arith.constant 1.000000e+00 : f32
    %21 = vector.broadcast %cst_14 : f32 to vector<16x32xf32>
    %22 = arith.addf %21, %20 : vector<16x32xf32>
    %23 = arith.divf %21, %22 : vector<16x32xf32>
    %24 = arith.mulf %18, %23 : vector<16x32xf32>
    %c0_15 = arith.constant 0 : index
    %c0_16 = arith.constant 0 : index
    %25 = vector.load %arg7[%c0_15, %c0_16] : memref<32x128xf32, #tpu.memory_space<vmem>>, vector<32x128xf32>
    %cst_17 = arith.constant dense<0.000000e+00> : vector<16x128xf32>
    %26 = tpu.matmul %24, %25, %cst_17 {dimension_numbers = #tpu.dot_dimension_numbers<[1], [0], [0], [1], [0, 0, 1, 1], [], []>} : vector<16x32xf32>, vector<32x128xf32>, vector<16x128xf32> -> vector<16x128xf32>
    %c0_18 = arith.constant 0 : index
    %c0_19 = arith.constant 0 : index
    %27 = vector.load %arg8[%c0_18, %c0_19] : memref<16x128xf32, #tpu.memory_space<vmem>>, vector<16x128xf32>
    tpu.vector_store %arg8[%c0_18, %c0_19], %26 {strides = array<i32>} : memref<16x128xf32, #tpu.memory_space<vmem>>, vector<16x128xf32>,
    return
  }
  func.func @transform_0(%arg0: i32) -> (i32, i32) {
    %c0_i32 = arith.constant 0 : i32
    %c0_i32_0 = arith.constant 0 : i32
    return %arg0, %c0_i32 : i32, i32
  }
  func.func @transform_1(%arg0: i32) -> (i32, i32) {
    %c0_i32 = arith.constant 0 : i32
    %c0_i32_0 = arith.constant 0 : i32
    %c0_i32_1 = arith.constant 0 : i32
    return %c0_i32, %c0_i32_0 : i32, i32
  }
  func.func @transform_2(%arg0: i32) -> (i32, i32) {
    %c0_i32 = arith.constant 0 : i32
    %c0_i32_0 = arith.constant 0 : i32
    %c0_i32_1 = arith.constant 0 : i32
    return %c0_i32, %c0_i32_0 : i32, i32
  }
  func.func @transform_3(%arg0: i32) -> (i32, i32) {
    %c0_i32 = arith.constant 0 : i32
    %c0_i32_0 = arith.constant 0 : i32
    %c0_i32_1 = arith.constant 0 : i32
    return %c0_i32, %c0_i32_0 : i32, i32
  }
  func.func @transform_4(%arg0: i32) -> (i32, i32) {
    %c0_i32 = arith.constant 0 : i32
    %c0_i32_0 = arith.constant 0 : i32
    %c0_i32_1 = arith.constant 0 : i32
    return %c0_i32, %c0_i32_0 : i32, i32
  }
  func.func @transform_5(%arg0: i32) -> (i32, i32) {
    %c0_i32 = arith.constant 0 : i32
    %c0_i32_0 = arith.constant 0 : i32
    %c0_i32_1 = arith.constant 0 : i32
    return %c0_i32, %c0_i32_0 : i32, i32
  }
  func.func @transform_6(%arg0: i32) -> (i32, i32) {
    %c0_i32 = arith.constant 0 : i32
    %c0_i32_0 = arith.constant 0 : i32
    %c0_i32_1 = arith.constant 0 : i32
    return %c0_i32, %c0_i32_0 : i32, i32
  }
  func.func @transform_7(%arg0: i32) -> (i32, i32) {
    %c0_i32 = arith.constant 0 : i32
    %c0_i32_0 = arith.constant 0 : i32
    return %arg0, %c0_i32 : i32, i32
  }
}

</mosaic_0001>

<bundles_post_ra>
// kernel: _agent_dense_padded.1
= control target key start
LH: loop header
LB: loop body
LE: loop exit
PB: predicated region body
PF: predicated region fallthrough
CT: control target
= control target key end

     0   :  { %12 = vsyncpa [#allocation3], 0  ;;  %s748_s0 = inlined_call_operand.vmem [shape: f32[16,2], index: 0, kind: input, shape index: {}]   ;;  %s749_s1 = inlined_call_operand.vmem [shape: f32[2,32], index: 1, kind: input, shape index: {}]   ;;  %s750_s2 = inlined_call_operand.hbm [shape: f32[32,32], index: 2, kind: input, shape index: {}]   ;;  %s751_s3 = inlined_call_operand.vmem [shape: f32[1,32], index: 3, kind: input, shape index: {}]   ;;  %s752_s4 = inlined_call_operand.hbm [shape: f32[32,32], index: 4, kind: input, shape index: {}]   ;;  %s753_s5 = inlined_call_operand.vmem [shape: f32[1,32], index: 5, kind: input, shape index: {}]   ;;  %s754_s6 = inlined_call_operand.hbm [shape: f32[32,128], index: 6, kind: input, shape index: {}]   ;;  %s755_s7 = inlined_call_operand.hbm [shape: f32[16,128], index: 7, kind: output, shape index: {}]  }
   0x1   :  { %13 = vsyncpa [#allocation6], 0 }
   0x2   :  { %14 = vsyncpa [#allocation4], 0  ;;  %s657_s24 = smov [#allocation5]   ;;  %s658_s26 = smov [#allocation2]  }
   0x3   :  { %s38_s25 = sshll.u32 %s657_s24, 4  ;;  %s24_s27 = sshll.u32 %s658_s26, 4  ;;  %s39_s25 = int_to_ptr.vmem [resolvable:$true] %s38_s25  ;;  %s25_s27 = int_to_ptr.vmem [resolvable:$true] %s24_s27 }
   0x4   :  { %s579_s28 = scalar_lea.vmem %s39_s25, 512  ;;  %p584_p1 = scmp.lt.s32.totalorder %s39_s25, %s39_s25 }
   0x5   :  { %p580_p0 = scmp.ne.s32.totalorder %s39_s25, %s579_s28  ;;  %p585_p2 = scmp.lt.s32.totalorder %s579_s28, %s579_s28 }
   0x7   :  { %p586_p3 = por %p585_p2, %p584_p1 }
   0x9   :  { %p587_p4 = pnand %p586_p3, %p580_p0 }
   0xb   :  { %590 = shalt.err (!%p587_p4)
}
   0xc   :  { %s659_s29 = smov 128   ;;  %s660_s30 = smov 8  }
   0xd   :  { %44 = dma.hbm_to_vmem [thread:$0]  %s752_s4, 512, %s39_s25, [#allocation6], %s659_s29, %s659_s29, %s660_s30  }
   0xe   :  { %s599_s10 = scalar_lea.vmem %s25_s27, 512  ;;  %p604_p6 = scmp.lt.s32.totalorder %s25_s27, %s25_s27 }
   0xf   :  { %p600_p5 = scmp.ne.s32.totalorder %s25_s27, %s599_s10  ;;  %p605_p7 = scmp.lt.s32.totalorder %s599_s10, %s599_s10 }
  0x11   :  { %p606_p8 = por %p605_p7, %p604_p6 }
  0x13   :  { %p607_p9 = pnand %p606_p8, %p600_p5 }
  0x15   :  { %610 = shalt.err (!%p607_p9)
}
  0x16   :  { %30 = dma.hbm_to_vmem [thread:$0]  %s750_s2, 512, %s25_s27, [#allocation3], %s659_s29, %s659_s29, %s660_s30  }
  0x17   :  { %s661_s13 = smov [#allocation7]  }
  0x18   :  { %s52_s14 = sshll.u32 %s661_s13, 4  ;;  %s53_s14 = int_to_ptr.vmem [resolvable:$true] %s52_s14 }
  0x19   :  { %s619_s15 = scalar_lea.vmem %s53_s14, 512  ;;  %p624_p11 = scmp.lt.s32.totalorder %s53_s14, %s53_s14 }
  0x1a   :  { %p620_p10 = scmp.ne.s32.totalorder %s53_s14, %s619_s15  ;;  %p625_p12 = scmp.lt.s32.totalorder %s619_s15, %s619_s15 }
  0x1c   :  { %p626_p13 = por %p625_p12, %p624_p11 }
  0x1e   :  { %p627_p0 = pnand %p626_p13, %p620_p10 }
  0x20   :  { %630 = shalt.err (!%p627_p0)
}
  0x21   :  { %58 = dma.hbm_to_vmem [thread:$0]  %s754_s6, 512, %s53_s14, [#allocation6], %s659_s29, %s659_s29, %s660_s30  }
  0x22   :  { %651 = dma.done.wait [#allocation3], 512  }
  0x23   :  { %652 = vsyncadd [#allocation3], 4294966784 }
  0x24   :  { %653 = dma.done.wait [#allocation6], 1024  }
  0x25   :  { %654 = vsyncadd [#allocation6], 4294966272  ;;  %vm78_vm0 = vcmask 1041408   ;;  %vm71_vm1 = vcmask 15360   ;;  %v70_v0 = vld [vmem:[%s749_s1] sm:$0x3] }
  0x26   :  { %v68_v1 = vld [vmem:[%s748_s0] sm:$0xff]  ;;  %v69_v2 = vld [vmem:[%s748_s0 + $0x8] sm:$0xff]  ;;  %511 = vmatprep.subr.msk.mxu0 %vm78_vm0, %v70_v0  ;;  %v160_v3 = vld [vmem:[#allocation2 + $0x18] sm:$0xff]  ;;  %vm168_vm2 = vcmask 261120  }
  0x27   :  { %513 = vmatprep.mubr.msk.f32.mxu0 %vm71_vm1, %v68_v1  ;;  %v159_v4 = vld [vmem:[#allocation2 + $0x10] sm:$0xff]  ;;  %512 = vmatpush3.msk.msra.mxu0 %vm78_vm0, %v70_v0  ;;  %v158_v5 = vld [vmem:[#allocation2 + $0x8] sm:$0xff]  ;;  %v157_v6 = vld [vmem:[#allocation2] sm:$0xff] }
  0x28   :  { %516 = vmatprep.subr.mxu1 %v160_v3  ;;  %514 = vmatmul.mubr.msk.f32.vlgmr.msra.gmra.mxu0 %vm71_vm1, %v69_v2  ;;  %v267_v9 = vld [vmem:[#allocation5 + $0x18] sm:$0xff]  ;;  %v266_v10 = vld [vmem:[#allocation5 + $0x10] sm:$0xff]  ;;  %v265_v11 = vld [vmem:[#allocation5 + $0x8] sm:$0xff] }
  0x29   :  { %517 = vmatpush3.msra.mxu1 %v160_v3  ;;  %527 = vmatprep.subr.mxu0 %v267_v9  ;;  %v264_v12 = vld [vmem:[#allocation5] sm:$0xff]  ;;  %v373_v28 = vld [vmem:[#allocation7 + $0x18] sm:$0xff]  ;;  %v372_v29 = vld [vmem:[#allocation7 + $0x10] sm:$0xff] }
  0x2a   :  { %518 = vmatprep.subr.mxu1 %v159_v4  ;;  %528 = vmatpush3.msra.mxu0 %v267_v9  ;;  %v478_v13 = vld [vmem:[%s751_s3] ss:$0 sm:$0xff]  ;;  %v371_v30 = vld [vmem:[#allocation7 + $0x8] sm:$0xff] }
  0x2b   :  { %519 = vmatpush3.msra.mxu1 %v159_v4  ;;  %529 = vmatprep.subr.mxu0 %v266_v10  ;;  %v370_v31 = vld [vmem:[#allocation7] sm:$0xff] }
  0x2c   :  { %520 = vmatprep.subr.mxu1 %v158_v5  ;;  %530 = vmatpush3.msra.mxu0 %v266_v10  ;;  %v483_v32 = vld [vmem:[%s753_s5] ss:$0 sm:$0xff]  ;;  %s662_s5 = smov [#allocation8]  }
  0x2d   :  { %521 = vmatpush3.msra.mxu1 %v158_v5  ;;  %531 = vmatprep.subr.mxu0 %v265_v11  ;;  %s462_s22 = sshll.u32 %s662_s5, 4  ;;  %s463_s22 = int_to_ptr.vmem [resolvable:$true] %s462_s22 }
  0x2e   :  { %522 = vmatprep.subr.mxu1 %v157_v6  ;;  %532 = vmatpush3.msra.mxu0 %v265_v11  ;;  %s631_s23 = scalar_lea.vmem %s463_s22, 256  ;;  %p636_p2 = scmp.lt.s32.totalorder %s463_s22, %s463_s22 }
  0x2f   :  { %523 = vmatpush3.msra.mxu1 %v157_v6  ;;  %533 = vmatprep.subr.mxu0 %v264_v12  ;;  %p632_p1 = scmp.ne.s32.totalorder %s463_s22, %s631_s23  ;;  %p637_p3 = scmp.lt.s32.totalorder %s631_s23, %s631_s23 }
  0x30   :  { %534 = vmatpush3.msra.mxu0 %v264_v12  ;;  %538 = vmatprep.subr.mxu1 %v373_v28 }
  0x31   :  { %p638_p4 = por %p637_p3, %p636_p2 }
  0x33   :  { %p639_p5 = pnand %p638_p4, %p632_p1 }
  0xe8   :  { %v515_v7 = vpop.f32.mrf.mxu0 }
  0xea   :  { %v148_v8 = vpop.f32.mrf.mxu0 }
  0xeb   :  { %524 = vmatprep.mubr.msk.f32.mxu1 %vm168_vm2, %v148_v8 }
  0xec   :  { %525 = vmatmul.mubr.msk.f32.vlgmr.msra.gmra.mxu1 %vm168_vm2, %v515_v7 }
  0xed   :  { %539 = vmatpush3.msra.mxu1 %v373_v28 }
  0xee   :  { %540 = vmatprep.subr.mxu1 %v372_v29 }
  0xef   :  { %541 = vmatpush3.msra.mxu1 %v372_v29 }
  0xf0   :  { %542 = vmatprep.subr.mxu1 %v371_v30 }
  0xf1   :  { %543 = vmatpush3.msra.mxu1 %v371_v30 }
  0xf2   :  { %544 = vmatprep.subr.mxu1 %v370_v31 }
  0xf3   :  { %545 = vmatpush3.msra.mxu1 %v370_v31 }
 0x1ac   :  { %v526_v14 = vpop.f32.mrf.mxu1 }
 0x1ad   :  { %v247_v15 = vadd.f32 %v526_v14, %v478_v13 }
 0x1ae   :  { %v241_v16 = vpop.f32.mrf.mxu1 }
 0x1af   :  { %v482_v17 = vmul.f32 -1.442695, %v247_v15  ;;  %v242_v18 = vadd.f32 %v478_v13, %v241_v16 }
 0x1b1   :  { %555 = vpow2.f32 %v482_v17  ;;  %v481_v19 = vmul.f32 -1.442695, %v242_v18 }
 0x1b3   :  { %557 = vpow2.f32 %v481_v19 }
 0x1be   :  { %v556_v20 = vpop.eup %555 }
 0x1bf   :  { %v257_v21 = vadd.f32 1.0, %v556_v20 }
 0x1c0   :  { %v558_v22 = vpop.eup %557 }
 0x1c1   :  { %v256_v23 = vadd.f32 1.0, %v558_v22  ;;  %559 = vrcp.f32 %v257_v21 }
 0x1c3   :  { %561 = vrcp.f32 %v256_v23 }
 0x1ce   :  { %v560_v24 = vpop.eup %559 }
 0x1cf   :  { %v263_v27 = vmul.f32 %v560_v24, %v247_v15 }
 0x1d0   :  { %v562_v25 = vpop.eup %561 }
 0x1d1   :  { %v262_v26 = vmul.f32 %v562_v25, %v242_v18 }
 0x1d3   :  { %535 = vmatprep.mubr.msk.f32.mxu0 %vm168_vm2, %v262_v26 }
 0x1d4   :  { %536 = vmatmul.mubr.msk.f32.vlgmr.msra.gmra.mxu0 %vm168_vm2, %v263_v27 }
 0x294   :  { %v537_v33 = vpop.f32.mrf.mxu0 }
 0x295   :  { %v353_v34 = vadd.f32 %v537_v33, %v483_v32 }
 0x296   :  { %v347_v35 = vpop.f32.mrf.mxu0 }
 0x297   :  { %v487_v36 = vmul.f32 -1.442695, %v353_v34  ;;  %v348_v37 = vadd.f32 %v483_v32, %v347_v35 }
 0x299   :  { %563 = vpow2.f32 %v487_v36  ;;  %v486_v38 = vmul.f32 -1.442695, %v348_v37 }
 0x29b   :  { %565 = vpow2.f32 %v486_v38 }
 0x2a6   :  { %v564_v39 = vpop.eup %563 }
 0x2a7   :  { %v363_v40 = vadd.f32 1.0, %v564_v39 }
 0x2a8   :  { %v566_v41 = vpop.eup %565 }
 0x2a9   :  { %v362_v42 = vadd.f32 1.0, %v566_v41  ;;  %567 = vrcp.f32 %v363_v40 }
 0x2ab   :  { %569 = vrcp.f32 %v362_v42 }
 0x2b6   :  { %v568_v43 = vpop.eup %567 }
 0x2b7   :  { %v369_v46 = vmul.f32 %v568_v43, %v353_v34 }
 0x2b8   :  { %v570_v44 = vpop.eup %569 }
 0x2b9   :  { %v368_v45 = vmul.f32 %v570_v44, %v348_v37 }
 0x2bb   :  { %546 = vmatprep.mubr.msk.f32.mxu1 %vm168_vm2, %v368_v45 }
 0x2bc   :  { %547 = vmatmul.mubr.msk.f32.vlgmr.msra.gmra.mxu1 %vm168_vm2, %v369_v46 }
 0x37c   :  { %v548_v47 = vpop.f32.mrf.mxu1 }
 0x37d   :  { %456 = vst [vmem:[#allocation8 + $0x8] sm:$0xff] %v548_v47 }
 0x37e   :  { %v446_v48 = vpop.f32.mrf.mxu1 }
 0x37f   :  { %455 = vst [vmem:[#allocation8] sm:$0xff] %v446_v48 }
 0x380   :  { %642 = shalt.err (!%p639_p5)
}
 0x381   :  { %468 = dma.vmem_to_hbm [thread:$0]  %s463_s22, 256, %s755_s7, [#allocation4], %s659_s29, %s659_s29, %s660_s30  }
 0x382   :  { %655 = dma.done.wait [#allocation4], 256  }
 0x383   :  { %656 = vsyncadd [#allocation4], 4294967040 }
 0x384   :  { %472 = vsyncpa [#allocation3], 1 }
 0x385   :  { %473 = vsyncpa [#allocation6], 1 }
 0x386   :  { %474 = vsyncpa [#allocation4], 1 }

</bundles_post_ra>
